<compile_context>
chip_gen: v5e
topology: v5e:2x2
jax: 0.10.0
libtpu: 0.0.40
codegen_flags: <defaults>
</compile_context>

<pallas_src>
import functools

import jax
import jax.numpy as jnp
from jax.experimental import pallas as pl
from jax.experimental.pallas import tpu as pltpu


def _round_up(v: int, m: int) -> int:
    return (v + m - 1) // m * m


def gcn_kernel(adj_ref, x_ref, wt_ref, b_ref, o_ref, acc_ref):
    """Grid = (row tiles, k-reduction tiles); k is the last (sequential) axis.

    Per step:   acc[TM, F_in] += adj_tile[TM, TK] @ x_tile[TK, F_in]
    Last k:     o = relu(acc @ W^T + b)   (output written once per row tile).
    """
    k = pl.program_id(1)

    @pl.when(k == 0)
    def _init():
        acc_ref[...] = jnp.zeros_like(acc_ref)

    # adj lives in HBM as bf16 (entries are exactly 0/1, so the cast is lossless)
    # to halve the dominant N^2 HBM traffic; widen back to f32 for the matmul so
    # the f32 node features are not degraded.
    acc_ref[...] += jnp.dot(adj_ref[...].astype(jnp.float32), x_ref[...],
                            preferred_element_type=jnp.float32)

    @pl.when(k == pl.num_programs(1) - 1)
    def _finish():
        y = jnp.dot(acc_ref[...], wt_ref[...],
                    preferred_element_type=jnp.float32) + b_ref[...]
        o_ref[...] = jnp.maximum(y, 0.0).astype(o_ref.dtype)


@functools.partial(jax.jit, static_argnames=("tm", "tk"))
def graph_convolution_layer(x, adj, weight, bias, *, tm=256, tk=512):
    """Pallas TPU implementation of relu(linear(adj @ x)).

    x: [N, F_in] f32, adj: [N, N] f32 (0/1), weight: [F_out, F_in], bias: [F_out].
    Returns [N, F_out] f32.
    """
    n, f_in = x.shape
    f_out = weight.shape[0]

    # ---- padding / tile selection -------------------------------------------
    # Feature dims are padded to a multiple of 128 lanes: lane-dense (unmasked)
    # stores on the output tile and full-width MXU contractions instead of a
    # K=16 contraction / 32-lane masked store.
    f_in_p = _round_up(f_in, 128)
    f_out_p = _round_up(f_out, 128)
    # Row / reduction tiles. Defaults (tm=256, tk=512) are sized conservatively
    # for v7x's 64 MiB VMEM with bf16 adj + f32 features; on v5e/v6e (128 MiB
    # VMEM) tm=512, tk=2048 amortize the ~0.35 us/step overhead even better.
    tm_eff = min(tm, _round_up(n, 8))
    tk_eff = min(tk, _round_up(n, 128))
    n_rows = _round_up(n, tm_eff)   # padded output-row dim of adj
    n_cols = _round_up(n, tk_eff)   # padded reduction dim of adj

    # Zero padding is exact: padded adj columns / x rows contribute nothing to
    # the aggregation, and padded output rows / feature columns are sliced off.
    adj_p = jnp.pad(adj.astype(jnp.bfloat16), ((0, n_rows - n), (0, n_cols - n)))
    x_p = jnp.pad(x.astype(jnp.float32), ((0, n_cols - n), (0, f_in_p - f_in)))
    wt_p = jnp.pad(weight.T.astype(jnp.float32),
                   ((0, f_in_p - f_in), (0, f_out_p - f_out)))
    b_p = jnp.pad(bias.astype(jnp.float32), (0, f_out_p - f_out)).reshape(1, f_out_p)

    grid = (n_rows // tm_eff, n_cols // tk_eff)

    # NOTE: when F_out << F_in, reassociating to adj @ (x @ W^T) (pre-folding the
    # weight into the features) would shrink the N^2 term to 2*N^2*F_out FLOPs;
    # the demo shapes have F_out >= F_in so the (adj @ x) @ W^T association of the
    # original module is kept, with the weight applied once per row tile.
    out = pl.pallas_call(
        gcn_kernel,
        out_shape=jax.ShapeDtypeStruct((n_rows, f_out_p), jnp.float32),
        grid_spec=pltpu.PrefetchScalarGridSpec(
            num_scalar_prefetch=0,
            grid=grid,
            in_specs=[
                # If profiling on v7x shows exposed DMA after tiling, add
                # pipeline_mode=pl.Buffered(3) on this adj spec and sweep.
                pl.BlockSpec((tm_eff, tk_eff), lambda i, k: (i, k)),
                pl.BlockSpec((tk_eff, f_in_p), lambda i, k: (k, 0)),
                pl.BlockSpec((f_in_p, f_out_p), lambda i, k: (0, 0)),  # resident W^T
                pl.BlockSpec((1, f_out_p), lambda i, k: (0, 0)),       # resident bias
            ],
            out_specs=pl.BlockSpec((tm_eff, f_out_p), lambda i, k: (i, 0)),
            scratch_shapes=[pltpu.VMEM((tm_eff, f_in_p), jnp.float32)],
        ),
        compiler_params=pltpu.CompilerParams(
            # Row tiles are independent -> "parallel" (sharded across v7x's two
            # TensorCores); k is the reduction into the scratch accumulator ->
            # "arbitrary" (and placed last in the grid).
            dimension_semantics=("parallel", "arbitrary"),
            # Above the 32 MiB scoped default, below v7x's 64 MiB physical VMEM.
            vmem_limit_bytes=48 * 1024 * 1024,
        ),
        cost_estimate=pl.CostEstimate(
            flops=2 * n_rows * n_cols * f_in_p + 2 * n_rows * f_in_p * f_out_p,
            transcendentals=0,
            bytes_accessed=(2 * n_rows * n_cols          # bf16 adj
                            + 4 * n_cols * f_in_p        # f32 x
                            + 4 * f_in_p * f_out_p       # f32 W^T
                            + 4 * f_out_p                # bias
                            + 4 * n_rows * f_out_p),     # output
        ),
    )(adj_p, x_p, wt_p, b_p)

    return out[:n, :f_out]


def reference(x, adj, weight, bias):
    return jnp.maximum(jnp.matmul(adj, x) @ weight.T + bias, 0.0)


def _ring_adjacency(n):
    idx = jnp.arange(n)
    return (jnp.zeros((n, n), dtype=jnp.float32)
            .at[idx, (idx + 1) % n].set(1.0)
            .at[(idx + 1) % n, idx].set(1.0))


if __name__ == "__main__":
    key = jax.random.PRNGKey(0)
    k_x, k_w, k_b, k_big = jax.random.split(key, 4)

    # ---- primary case: small shapes consistent with the module (N=8, 16 -> 32) --
    N, F_IN, F_OUT = 8, 16, 32
    x = jax.random.normal(k_x, (N, F_IN), dtype=jnp.float32)
    bound = 1.0 / (F_IN ** 0.5)
    weight = jax.random.uniform(k_w, (F_OUT, F_IN), minval=-bound, maxval=bound,
                                dtype=jnp.float32)
    bias = jax.random.uniform(k_b, (F_OUT,), minval=-bound, maxval=bound,
                              dtype=jnp.float32)
    adj = _ring_adjacency(N)

    y = jax.block_until_ready(graph_convolution_layer(x, adj, weight, bias))
    y_ref = reference(x, adj, weight, bias)
    assert y.shape == (N, F_OUT)
    assert jnp.allclose(y, y_ref, atol=1e-5, rtol=1e-5), "mismatch vs reference"

    # ---- extra structural check: multi-tile grid + padding in every dim --------
    # Inputs are quantized (small integers / multiples of 1/128) so every matmul
    # is exact in f32 regardless of TPU matmul precision -> tight tolerance that
    # pins down the tiling / accumulation / padding logic.
    N3, FI3, FO3 = 600, 64, 192   # grid (3, 2) after padding to (768, 1024)
    k_a3, k_x3, k_w3, k_b3 = jax.random.split(k_big, 4)
    adj3 = (jax.random.uniform(k_a3, (N3, N3)) < 0.02).astype(jnp.float32)
    x3 = jnp.round(jax.random.normal(k_x3, (N3, FI3)) * 1.5)
    w3 = jnp.round(jax.random.uniform(k_w3, (FO3, FI3), minval=-16, maxval=16)) / 128.0
    b3 = jnp.round(jax.random.uniform(k_b3, (FO3,), minval=-64, maxval=64)) / 128.0

    y3 = jax.block_until_ready(graph_convolution_layer(x3, adj3, w3, b3))
    y3_ref = reference(x3, adj3, w3, b3)
    assert y3.shape == (N3, FO3)
    assert jnp.allclose(y3, y3_ref, atol=1e-5, rtol=1e-5), "mismatch (tiled case)"

    print("KERNEL_OK")
</pallas_src>

<mosaic_0001>
module attributes {stable_mosaic.version = 11 : i64} {
  func.func @gcn_kernel(%arg0: i32, %arg1: i32, %arg2: memref<8x128xbf16, #tpu.memory_space<vmem>>, %arg3: memref<128x128xf32, #tpu.memory_space<vmem>>, %arg4: memref<128x128xf32, #tpu.memory_space<vmem>>, %arg5: memref<1x128xf32, #tpu.memory_space<vmem>>, %arg6: memref<8x128xf32, #tpu.memory_space<vmem>>, %arg7: memref<8x128xf32, #tpu.memory_space<vmem>>) attributes {dimension_semantics = [#tpu.dimension_semantics<parallel>, #tpu.dimension_semantics<arbitrary>], iteration_bounds = array<i64: 1, 1>, scalar_prefetch = 0 : i64, scratch_operands = 1 : i64, tpu.core_type = #tpu.core_type<tc>, window_params = [{transform_indices = @transform_0, window_bounds = array<i64: 8, 128>}, {transform_indices = @transform_1, window_bounds = array<i64: 128, 128>}, {pipeline_mode = #tpu.pipeline_mode<synchronous>, transform_indices = @transform_2, window_bounds = array<i64: 128, 128>}, {pipeline_mode = #tpu.pipeline_mode<synchronous>, transform_indices = @transform_3, window_bounds = array<i64: 1, 128>}, {transform_indices = @transform_4, window_bounds = array<i64: 8, 128>}]} {
    %c0_i32 = arith.constant 0 : i32
    %0 = arith.cmpi eq, %arg1, %c0_i32 : i32
    %1 = arith.extui %0 : i1 to i32
    %c0_i32_0 = arith.constant 0 : i32
    %2 = arith.cmpi ne, %1, %c0_i32_0 : i32
    scf.if %2 {
      %cst_10 = arith.constant 0.000000e+00 : f32
      %13 = vector.broadcast %cst_10 : f32 to vector<8x128xf32>
      %c0_11 = arith.constant 0 : index
      %c0_12 = arith.constant 0 : index
      %14 = vector.load %arg7[%c0_11, %c0_12] : memref<8x128xf32, #tpu.memory_space<vmem>>, vector<8x128xf32>
      tpu.vector_store %arg7[%c0_11, %c0_12], %13 {strides = array<i32>} : memref<8x128xf32, #tpu.memory_space<vmem>>, vector<8x128xf32>,
    } else {
    }
    %c0 = arith.constant 0 : index
    %c0_1 = arith.constant 0 : index
    %3 = vector.load %arg7[%c0, %c0_1] : memref<8x128xf32, #tpu.memory_space<vmem>>, vector<8x128xf32>
    %c0_2 = arith.constant 0 : index
    %c0_3 = arith.constant 0 : index
    %4 = vector.load %arg2[%c0_2, %c0_3] : memref<8x128xbf16, #tpu.memory_space<vmem>>, vector<8x128xbf16>
    %5 = arith.extf %4 : vector<8x128xbf16> to vector<8x128xf32>
    %c0_4 = arith.constant 0 : index
    %c0_5 = arith.constant 0 : index
    %6 = vector.load %arg3[%c0_4, %c0_5] : memref<128x128xf32, #tpu.memory_space<vmem>>, vector<128x128xf32>
    %cst = arith.constant dense<0.000000e+00> : vector<8x128xf32>
    %7 = tpu.matmul %5, %6, %cst {dimension_numbers = #tpu.dot_dimension_numbers<[1], [0], [0], [1], [0, 0, 1, 1], [], []>} : vector<8x128xf32>, vector<128x128xf32>, vector<8x128xf32> -> vector<8x128xf32>
    %8 = arith.addf %3, %7 : vector<8x128xf32>
    %c0_6 = arith.constant 0 : index
    %c0_7 = arith.constant 0 : index
    %9 = vector.load %arg7[%c0_6, %c0_7] : memref<8x128xf32, #tpu.memory_space<vmem>>, vector<8x128xf32>
    tpu.vector_store %arg7[%c0_6, %c0_7], %8 {strides = array<i32>} : memref<8x128xf32, #tpu.memory_space<vmem>>, vector<8x128xf32>,
    %c0_i32_8 = arith.constant 0 : i32
    %10 = arith.cmpi eq, %arg1, %c0_i32_8 : i32
    %11 = arith.extui %10 : i1 to i32
    %c0_i32_9 = arith.constant 0 : i32
    %12 = arith.cmpi ne, %11, %c0_i32_9 : i32
    scf.if %12 {
      %c0_10 = arith.constant 0 : index
      %c0_11 = arith.constant 0 : index
      %13 = vector.load %arg7[%c0_10, %c0_11] : memref<8x128xf32, #tpu.memory_space<vmem>>, vector<8x128xf32>
      %c0_12 = arith.constant 0 : index
      %c0_13 = arith.constant 0 : index
      %14 = vector.load %arg4[%c0_12, %c0_13] : memref<128x128xf32, #tpu.memory_space<vmem>>, vector<128x128xf32>
      %cst_14 = arith.constant dense<0.000000e+00> : vector<8x128xf32>
      %15 = tpu.matmul %13, %14, %cst_14 {dimension_numbers = #tpu.dot_dimension_numbers<[1], [0], [0], [1], [0, 0, 1, 1], [], []>} : vector<8x128xf32>, vector<128x128xf32>, vector<8x128xf32> -> vector<8x128xf32>
      %c0_15 = arith.constant 0 : index
      %c0_16 = arith.constant 0 : index
      %16 = vector.load %arg5[%c0_15, %c0_16] : memref<1x128xf32, #tpu.memory_space<vmem>>, vector<1x128xf32>
      %17 = vector.broadcast %16 : vector<1x128xf32> to vector<8x128xf32>
      %18 = arith.addf %15, %17 : vector<8x128xf32>
      %cst_17 = arith.constant 0.000000e+00 : f32
      %19 = vector.broadcast %cst_17 : f32 to vector<8x128xf32>
      %20 = arith.maximumf %18, %19 : vector<8x128xf32>
      %c0_18 = arith.constant 0 : index
      %c0_19 = arith.constant 0 : index
      %21 = vector.load %arg6[%c0_18, %c0_19] : memref<8x128xf32, #tpu.memory_space<vmem>>, vector<8x128xf32>
      tpu.vector_store %arg6[%c0_18, %c0_19], %20 {strides = array<i32>} : memref<8x128xf32, #tpu.memory_space<vmem>>, vector<8x128xf32>,
    } else {
    }
    return
  }
  func.func @transform_0(%arg0: i32, %arg1: i32) -> (i32, i32) {
    %c0_i32 = arith.constant 0 : i32
    return %arg0, %arg1 : i32, i32
  }
  func.func @transform_1(%arg0: i32, %arg1: i32) -> (i32, i32) {
    %c0_i32 = arith.constant 0 : i32
    %c0_i32_0 = arith.constant 0 : i32
    return %arg1, %c0_i32 : i32, i32
  }
  func.func @transform_2(%arg0: i32, %arg1: i32) -> (i32, i32) {
    %c0_i32 = arith.constant 0 : i32
    %c0_i32_0 = arith.constant 0 : i32
    %c0_i32_1 = arith.constant 0 : i32
    return %c0_i32, %c0_i32_0 : i32, i32
  }
  func.func @transform_3(%arg0: i32, %arg1: i32) -> (i32, i32) {
    %c0_i32 = arith.constant 0 : i32
    %c0_i32_0 = arith.constant 0 : i32
    %c0_i32_1 = arith.constant 0 : i32
    return %c0_i32, %c0_i32_0 : i32, i32
  }
  func.func @transform_4(%arg0: i32, %arg1: i32) -> (i32, i32) {
    %c0_i32 = arith.constant 0 : i32
    %c0_i32_0 = arith.constant 0 : i32
    return %arg0, %c0_i32 : i32, i32
  }
}

</mosaic_0001>

<bundles_post_ra>
// kernel: graph_convolution_layer.1
= control target key start
LH: loop header
LB: loop body
LE: loop exit
PB: predicated region body
PF: predicated region fallthrough
CT: control target
= control target key end

     0   :  { %s285_s0 = inlined_call_operand.vmem [shape: bf16[8,128], index: 0, kind: input, shape index: {}]   ;;  %s286_s1 = inlined_call_operand.vmem [shape: f32[128,128], index: 1, kind: input, shape index: {}]   ;;  %s287_s2 = inlined_call_operand.vmem [shape: f32[128,128], index: 2, kind: input, shape index: {}]   ;;  %s288_s3 = inlined_call_operand.vmem [shape: f32[1,128], index: 3, kind: input, shape index: {}]   ;;  %s289_s4 = inlined_call_operand.hbm [shape: f32[8,128], index: 4, kind: output, shape index: {}]  }
   0x1   :  { %v41_v0 = vld [vmem:[%s286_s1 + $0x78] sm:$0xff]  ;;  %v40_v1 = vld [vmem:[%s286_s1 + $0x70] sm:$0xff]  ;;  %v39_v2 = vld [vmem:[%s286_s1 + $0x68] sm:$0xff] }
   0x2   :  { %42 = vmatpush.msra.mxu0 %v41_v0  ;;  %v38_v3 = vld [vmem:[%s286_s1 + $0x60] sm:$0xff]  ;;  %v83_v4 = vld [vmem:[%s287_s2 + $0x78] sm:$0xff]  ;;  %v82_v6 = vld [vmem:[%s287_s2 + $0x70] sm:$0xff] }
   0x3   :  { %v37_v5 = vld [vmem:[%s286_s1 + $0x58] sm:$0xff]  ;;  %88 = vmatpush.msra.mxu1 %v83_v4  ;;  %v81_v7 = vld [vmem:[%s287_s2 + $0x68] sm:$0xff]  ;;  %v36_v8 = vld [vmem:[%s286_s1 + $0x50] sm:$0xff] }
   0x4   :  { %43 = vmatpush.msra.mxu0 %v40_v1  ;;  %v80_v9 = vld [vmem:[%s287_s2 + $0x60] sm:$0xff]  ;;  %v35_v10 = vld [vmem:[%s286_s1 + $0x48] sm:$0xff]  ;;  %v79_v11 = vld [vmem:[%s287_s2 + $0x58] sm:$0xff] }
   0x5   :  { %89 = vmatpush.msra.mxu1 %v82_v6 }
   0x6   :  { %44 = vmatpush.msra.mxu0 %v39_v2 }
   0x7   :  { %90 = vmatpush.msra.mxu1 %v81_v7 }
   0x8   :  { %45 = vmatpush.msra.mxu0 %v38_v3 }
   0xa   :  { %46 = vmatpush.msra.mxu0 %v37_v5 }
   0xc   :  { %47 = vmatpush.msra.mxu0 %v36_v8 }
   0xd   :  { %9 = vsyncpa [#allocation4], 0  ;;  %v34_v12 = vld [vmem:[%s286_s1 + $0x40] sm:$0xff]  ;;  %91 = vmatpush.msra.mxu1 %v80_v9  ;;  %v78_v13 = vld [vmem:[%s287_s2 + $0x50] sm:$0xff]  ;;  %s154_s29 = smov [#allocation3]   ;;  %s117_s7 = sshll.u32 %s289_s4, 4  ;;  %s118_s7 = int_to_ptr.hbm [resolvable:$true] %s117_s7 }
   0xe   :  { %48 = vmatpush.msra.mxu0 %v35_v10  ;;  %v33_v14 = vld [vmem:[%s286_s1 + $0x38] sm:$0xff]  ;;  %v77_v15 = vld [vmem:[%s287_s2 + $0x48] sm:$0xff]  ;;  %v32_v16 = vld [vmem:[%s286_s1 + $0x30] sm:$0xff]  ;;  %s115_s30 = sshll.u32 %s154_s29, 4  ;;  %s116_s30 = int_to_ptr.vmem [resolvable:$true] %s115_s30 }
   0xf   :  { %92 = vmatpush.msra.mxu1 %v79_v11  ;;  %v76_v17 = vld [vmem:[%s287_s2 + $0x40] sm:$0xff]  ;;  %v31_v18 = vld [vmem:[%s286_s1 + $0x28] sm:$0xff]  ;;  %v75_v19 = vld [vmem:[%s287_s2 + $0x38] sm:$0xff] }
  0x10   :  { %49 = vmatpush.msra.mxu0 %v34_v12  ;;  %v30_v20 = vld [vmem:[%s286_s1 + $0x20] sm:$0xff]  ;;  %v74_v21 = vld [vmem:[%s287_s2 + $0x30] sm:$0xff]  ;;  %v29_v22 = vld [vmem:[%s286_s1 + $0x18] sm:$0xff] }
  0x11   :  { %93 = vmatpush.msra.mxu1 %v78_v13  ;;  %v73_v23 = vld [vmem:[%s287_s2 + $0x28] sm:$0xff]  ;;  %v28_v24 = vld [vmem:[%s286_s1 + $0x10] sm:$0xff]  ;;  %v24_v25 = vld [vmem:[%s285_s0] sm:$0xf] }
  0x12   :  { %50 = vmatpush.msra.mxu0 %v33_v14  ;;  %v72_v26 = vld [vmem:[%s287_s2 + $0x20] sm:$0xff]  ;;  %v27_v27 = vld [vmem:[%s286_s1 + $0x8] sm:$0xff]  ;;  %v71_v28 = vld [vmem:[%s287_s2 + $0x18] sm:$0xff]  ;;  %v25_v30 = vunpack.c.l.bf16 %v24_v25 }
  0x13   :  { %94 = vmatpush.msra.mxu1 %v77_v15  ;;  %v26_v29 = vld [vmem:[%s286_s1] sm:$0xff]  ;;  %v70_v31 = vld [vmem:[%s287_s2 + $0x10] sm:$0xff]  ;;  %v69_v32 = vld [vmem:[%s287_s2 + $0x8] sm:$0xff] }
  0x14   :  { %51 = vmatpush.msra.mxu0 %v32_v16  ;;  %v68_v33 = vld [vmem:[%s287_s2] sm:$0xff] }
  0x15   :  { %95 = vmatpush.msra.mxu1 %v76_v17  ;;  %v127_v35 = vld [vmem:[%s288_s3] ss:$0 sm:$0xff] }
  0x16   :  { %52 = vmatpush.msra.mxu0 %v31_v18 }
  0x17   :  { %96 = vmatpush.msra.mxu1 %v75_v19 }
  0x18   :  { %53 = vmatpush.msra.mxu0 %v30_v20 }
  0x19   :  { %97 = vmatpush.msra.mxu1 %v74_v21 }
  0x1a   :  { %54 = vmatpush.msra.mxu0 %v29_v22 }
  0x1b   :  { %98 = vmatpush.msra.mxu1 %v73_v23 }
  0x1c   :  { %55 = vmatpush.msra.mxu0 %v28_v24 }
  0x1d   :  { %99 = vmatpush.msra.mxu1 %v72_v26 }
  0x1e   :  { %56 = vmatpush.msra.mxu0 %v27_v27 }
  0x1f   :  { %100 = vmatpush.msra.mxu1 %v71_v28 }
  0x20   :  { %57 = vmatpush.msra.mxu0 %v26_v29 }
  0x21   :  { %58 = vmatmul.f32.vlgmr.msra.gmra.mxu0 %v25_v30  ;;  %101 = vmatpush.msra.mxu1 %v70_v31 }
  0x23   :  { %102 = vmatpush.msra.mxu1 %v69_v32 }
  0x25   :  { %103 = vmatpush.msra.mxu1 %v68_v33 }
  0x9e   :  { %v59_v34 = vpop.f32.mrf.mxu0 }
  0x9f   :  { %104 = vmatmul.f32.vlgmr.msra.gmra.mxu1 %v59_v34 }
 0x11c   :  { %v105_v36 = vpop.f32.mrf.mxu1 }
 0x11d   :  { %v106_v37 = vadd.f32 %v127_v35, %v105_v36 }
 0x11f   :  { %v108_v38 = vmax.f32 %v106_v37, 0.0 }
 0x121   :  { %109 = vst [vmem:[#allocation3] sm:$0xff] %v108_v38 }
 0x122   :  { %120 = dma.vmem_to_hbm [thread:$0]  %s116_s30, 128, %s118_s7, [#allocation4]  }
 0x123   :  { %152 = dma.done.wait [#allocation4], 128  }
 0x124   :  { %153 = vsyncadd [#allocation4], 4294967168 }
 0x125   :  { %125 = vsyncpa [#allocation4], 1 }

</bundles_post_ra>
